<compile_context>
chip_gen: v7x
topology: tpu7x:2x2x1
jax: 0.10.0
libtpu: 0.0.40
codegen_flags: <defaults>
</compile_context>

<pallas_src>
import jax
import jax.numpy as jnp
import numpy as np
from jax.experimental import pallas as pl
from jax.experimental.pallas import tpu as pltpu

SEQ_LEN = 8                     # seq_len passed to forward()
D_MODEL = 32                    # d_model
MAX_REL = 5                     # max_relative_position (small so clamping is exercised)
VOCAB = 2 * MAX_REL + 1         # embedding table rows


def rel_pos_kernel(onehot_ref, table_ref, out_ref):
    """onehot_ref: (S*S, V) f32 VMEM (trace-time constant pattern).
    table_ref:  (V, D) f32 VMEM.
    out_ref:    (S*S, D) f32 VMEM.
    Embedding gather expressed as one dense MXU matmul; no VPU work."""
    out_ref[...] = jnp.dot(onehot_ref[...], table_ref[...],
                           preferred_element_type=jnp.float32)


def _build_onehot(seq_len, max_rel):
    """Trace-time (numpy) construction of the (S*S, V) one-hot selection matrix.

    Row r = i*seq_len + j selects table row clamp(j - i, -max_rel, max_rel) + max_rel.
    Rows contain exactly one 1.0, so the f32 matmul reproduces table rows exactly.
    """
    rng = np.arange(seq_len)
    dist = rng[None, :] - rng[:, None]                      # dist[i, j] = j - i
    idx = np.clip(dist, -max_rel, max_rel) + max_rel        # (S, S) in [0, V)
    flat = idx.reshape(-1)                                  # (S*S,)
    vocab = 2 * max_rel + 1
    onehot = (flat[:, None] == np.arange(vocab)[None, :]).astype(np.float32)
    return jnp.asarray(onehot)                              # (S*S, V)


def relative_position_encoding(table, seq_len, max_rel=MAX_REL):
    """table: (2*max_rel+1, d_model) float32  ->  (seq_len, seq_len, d_model) float32."""
    vocab, d_model = table.shape
    assert vocab == 2 * max_rel + 1
    onehot = _build_onehot(seq_len, max_rel)                # static, built per seq_len
    flat = pl.pallas_call(
        rel_pos_kernel,
        out_shape=jax.ShapeDtypeStruct((seq_len * seq_len, d_model), jnp.float32),
        in_specs=[pl.BlockSpec(memory_space=pltpu.MemorySpace.VMEM),
                  pl.BlockSpec(memory_space=pltpu.MemorySpace.VMEM)],
        out_specs=pl.BlockSpec(memory_space=pltpu.MemorySpace.VMEM),
    )(onehot, table)
    return flat.reshape(seq_len, seq_len, d_model)


def reference(table, seq_len, max_rel=MAX_REL):
    """Pure-JAX reference matching the PyTorch forward."""
    rng = jnp.arange(seq_len)
    dist = rng[None, :] - rng[:, None]                      # dist[i, j] = j - i
    idx = jnp.clip(dist, -max_rel, max_rel) + max_rel
    return table[idx]                                       # (S, S, D)


if __name__ == "__main__":
    key = jax.random.PRNGKey(0)
    table = jax.random.normal(key, (VOCAB, D_MODEL), jnp.float32)

    out = relative_position_encoding(table, SEQ_LEN)
    out = jax.block_until_ready(out)

    ref = reference(table, SEQ_LEN)
    np.testing.assert_allclose(np.asarray(out), np.asarray(ref),
                               rtol=1e-6, atol=1e-6)
    print("KERNEL_OK")
</pallas_src>

<mosaic_0001>
module attributes {stable_mosaic.version = 11 : i64} {
  func.func @rel_pos_kernel(%arg0: memref<64x11xf32, #tpu.memory_space<vmem>>, %arg1: memref<11x32xf32, #tpu.memory_space<vmem>>, %arg2: memref<64x32xf32, #tpu.memory_space<vmem>>) attributes {dimension_semantics = [], scalar_prefetch = 0 : i64, scratch_operands = 0 : i64, tpu.core_type = #tpu.core_type<tc>} {
    %c0 = arith.constant 0 : index
    %c0_0 = arith.constant 0 : index
    %0 = vector.load %arg0[%c0, %c0_0] : memref<64x11xf32, #tpu.memory_space<vmem>>, vector<64x11xf32>
    %c0_1 = arith.constant 0 : index
    %c0_2 = arith.constant 0 : index
    %1 = vector.load %arg1[%c0_1, %c0_2] : memref<11x32xf32, #tpu.memory_space<vmem>>, vector<11x32xf32>
    %cst = arith.constant dense<0.000000e+00> : vector<64x32xf32>
    %2 = tpu.matmul %0, %1, %cst {dimension_numbers = #tpu.dot_dimension_numbers<[1], [0], [0], [1], [0, 0, 1, 1], [], []>} : vector<64x11xf32>, vector<11x32xf32>, vector<64x32xf32> -> vector<64x32xf32>
    %c0_3 = arith.constant 0 : index
    %c0_4 = arith.constant 0 : index
    %3 = vector.load %arg2[%c0_3, %c0_4] : memref<64x32xf32, #tpu.memory_space<vmem>>, vector<64x32xf32>
    tpu.vector_store %arg2[%c0_3, %c0_4], %2 {strides = array<i32>} : memref<64x32xf32, #tpu.memory_space<vmem>>, vector<64x32xf32>,
    return
  }
}

</mosaic_0001>

<bundles_post_ra>
// kernel: tpu_custom_call.1
= control target key start
LH: loop header
LB: loop body
LE: loop exit
PB: predicated region body
PF: predicated region fallthrough
CT: control target
= control target key end

     0   :  { %vm46_vm0 = vcmask 1042432   ;;  %vm21_vm1 = vcmask 89088   ;;  %vm212_vm2 = vmmov 1   ;;  %vm155_vm4 = vcmask 261120   ;;  %s298_s1 = inlined_call_operand.vmem [shape: f32[11,32], index: 1, kind: input, shape index: {}]   ;;  %s299_s0 = inlined_call_operand.vmem [shape: f32[64,11], index: 0, kind: input, shape index: {}]   ;;  %s300_s2 = inlined_call_operand.vmem [shape: f32[64,32], index: 2, kind: output, shape index: {}]  }
   0x1   :  { %v19_v0 = vld [vmem:[%s298_s1] sm:$0xff]  ;;  %v20_v1 = vld [vmem:[%s298_s1 + $0x8] sm:$0x7]  ;;  %vm204_vm3 = vmpackc.low %vm46_vm0, %vm212_vm2 }
   0x2   :  { %v203_v2 = vpack.c.bf16 %v20_v1, %v19_v0  ;;  %v11_v3 = vld [vmem:[%s299_s0] sm:$0xff]  ;;  %v12_v5 = vld [vmem:[%s299_s0 + $0x8] sm:$0xff]  ;;  %v13_v7 = vld [vmem:[%s299_s0 + $0x10] sm:$0xff] }
   0x3   :  { %v15_v4 = vld [vmem:[%s299_s0 + $0x20] sm:$0xff]  ;;  %191 = vmatprep.mubr.msk.f32.mxu0 %vm21_vm1, %v11_v3  ;;  %v16_v6 = vld [vmem:[%s299_s0 + $0x28] sm:$0xff]  ;;  %v17_v8 = vld [vmem:[%s299_s0 + $0x30] sm:$0xff] }
   0x4   :  { %197 = vmatprep.mubr.msk.f32.mxu1 %vm21_vm1, %v15_v4  ;;  %205 = vmatprep.subr.msk.bf16.mxu0 %vm204_vm3, %v203_v2  ;;  %v14_v9 = vld [vmem:[%s299_s0 + $0x18] sm:$0xff] }
   0x5   :  { %209 = vmatprep.subr.msk.bf16.mxu1 %vm204_vm3, %v203_v2  ;;  %208 = vmatpush3.bf16.msk.msra.mxu0 %vm204_vm3, %v203_v2  ;;  %v18_v10 = vld [vmem:[%s299_s0 + $0x38] sm:$0xff] }
   0x6   :  { %210 = vmatpush3.bf16.msk.msra.mxu1 %vm204_vm3, %v203_v2 }
   0x8   :  { %192 = vmatmul.mubr.msk.f32.vlgmr.msra.gmra.mrb[0].mxu0 %vm21_vm1, %v12_v5 }
   0x9   :  { %198 = vmatmul.mubr.msk.f32.vlgmr.msra.gmra.mrb[0].mxu1 %vm21_vm1, %v16_v6  ;;  %194 = vmatprep.mubr.msk.f32.mxu0 %vm21_vm1, %v13_v7 }
   0xa   :  { %200 = vmatprep.mubr.msk.f32.mxu1 %vm21_vm1, %v17_v8 }
   0xc   :  { %195 = vmatmul.mubr.msk.f32.gmra.mrb[2].mxu0 %vm21_vm1, %v14_v9 }
   0xd   :  { %201 = vmatmul.mubr.msk.f32.gmra.mrb[2].mxu1 %vm21_vm1, %v18_v10 }
  0xdb   :  { %v193_v11 = vpop.f32.mrb[0].mxu0 }
  0xdc   :  { %v199_v12 = vpop.f32.mrb[0].mxu1  ;;  %157 = vst.msk [vmem:[%s300_s2 + $0x8] sm:$0xff] %vm155_vm4, %v193_v11  ;;  %v116_v13 = vpop.f32.mrb[1].mxu0 }
  0xdd   :  { %161 = vst.msk [vmem:[%s300_s2 + $0x28] sm:$0xff] %vm155_vm4, %v199_v12  ;;  %v136_v14 = vpop.f32.mrb[1].mxu1  ;;  %156 = vst.msk [vmem:[%s300_s2] sm:$0xff] %vm155_vm4, %v116_v13 }
  0xde   :  { %160 = vst.msk [vmem:[%s300_s2 + $0x20] sm:$0xff] %vm155_vm4, %v136_v14 }
  0xdf   :  { %v196_v15 = vpop.f32.mrb[2].mxu0 }
  0xe0   :  { %v202_v16 = vpop.f32.mrb[2].mxu1  ;;  %159 = vst.msk [vmem:[%s300_s2 + $0x18] sm:$0xff] %vm155_vm4, %v196_v15  ;;  %v126_v17 = vpop.f32.mrb[3].mxu0 }
  0xe1   :  { %163 = vst.msk [vmem:[%s300_s2 + $0x38] sm:$0xff] %vm155_vm4, %v202_v16  ;;  %v146_v18 = vpop.f32.mrb[3].mxu1  ;;  %158 = vst.msk [vmem:[%s300_s2 + $0x10] sm:$0xff] %vm155_vm4, %v126_v17 }
  0xe2   :  { %162 = vst.msk [vmem:[%s300_s2 + $0x30] sm:$0xff] %vm155_vm4, %v146_v18 }

</bundles_post_ra>
